<compile_context>
chip_gen: v7x
topology: tpu7x:2x2x1
jax: 0.10.0
libtpu: 0.0.40
codegen_flags: <defaults>
</compile_context>

<pallas_src>
import functools

import numpy as np
import jax
import jax.numpy as jnp
from jax import lax
from jax.experimental import pallas as pl
from jax.experimental.pallas import tpu as pltpu


# ----------------------------------------------------------------------------
# Constant construction (same math as the PyTorch reference).
# ----------------------------------------------------------------------------
def dct_mat(size):
    m = [[(np.sqrt(1.0 / size) if i == 0 else np.sqrt(2.0 / size))
          * np.cos((j + 0.5) * np.pi * i / size)
          for j in range(size)] for i in range(size)]
    return np.asarray(m, dtype=np.float32)


def generate_filter(start, end, size):
    return np.asarray(
        [[0.0 if (i + j) > end or (i + j) < start else 1.0
          for j in range(size)] for i in range(size)],
        dtype=np.float32)


def round_up(a, b):
    return (a + b - 1) // b * b


def block_diag(m, reps):
    s = m.shape[0]
    out = jnp.zeros((reps * s, reps * s), dtype=m.dtype)
    for r in range(reps):
        out = out.at[r * s:(r + 1) * s, r * s:(r + 1) * s].set(m)
    return out


# ----------------------------------------------------------------------------
# Kernel 1: FAD head, lane-batched.  One batch element per grid step.
# ----------------------------------------------------------------------------
def fad_head_kernel(d_ref, dt_ref, dtbd_ref, dbd_ref, filt_ref, x_ref, o_ref):
    # x_ref[0]: (S, 3S) with channel c occupying columns [c*S, (c+1)*S).
    a = jnp.dot(d_ref[...], x_ref[0], preferred_element_type=jnp.float32)
    # freq block c = D @ x[c] @ D^T  (block-diagonal right multiply).
    freq = jnp.dot(a, dtbd_ref[...], preferred_element_type=jnp.float32)
    # Column block k = i*3 + c holds freq[c]; filt_ref block k holds filt[i].
    freq4 = jnp.concatenate([freq, freq, freq, freq], axis=1)        # (S, 12S)
    xp = freq4 * filt_ref[...]                                       # (S, 12S)
    # y block k = D^T @ xp[k] @ D.
    c1 = jnp.dot(dt_ref[...], xp, preferred_element_type=jnp.float32)
    o_ref[0] = jnp.dot(c1, dbd_ref[...], preferred_element_type=jnp.float32)


def fad_head(x, D, DT, filt):
    N, C, S, _ = x.shape
    assert C == 3
    S12 = 4 * C * S
    # Channels concatenated on the lane axis: x_cat[n, i, c*S + j] = x[n, c, i, j]
    x_cat = x.transpose(0, 2, 1, 3).reshape(N, S, C * S)
    dt_bd3 = block_diag(DT, C)                    # (3S, 3S)
    d_bd12 = block_diag(D, 4 * C)                 # (12S, 12S)
    # filt_exp[:, (i*3+c)*S + j] = filt[i, :, j]
    filt_exp = jnp.repeat(filt, C, axis=0).transpose(1, 0, 2).reshape(S, S12)

    fea_cat = pl.pallas_call(
        fad_head_kernel,
        out_shape=jax.ShapeDtypeStruct((N, S, S12), jnp.float32),
        grid=(N,),
        in_specs=[
            pl.BlockSpec((S, S), lambda n: (0, 0)),
            pl.BlockSpec((S, S), lambda n: (0, 0)),
            pl.BlockSpec((C * S, C * S), lambda n: (0, 0)),
            pl.BlockSpec((S12, S12), lambda n: (0, 0)),
            pl.BlockSpec((S, S12), lambda n: (0, 0)),
            pl.BlockSpec((1, S, C * S), lambda n: (n, 0, 0)),
        ],
        out_specs=pl.BlockSpec((1, S, S12), lambda n: (n, 0, 0)),
        compiler_params=pltpu.CompilerParams(
            dimension_semantics=("parallel",),
            vmem_limit_bytes=32 * 1024 * 1024),
    )(D, DT, dt_bd3, d_bd12, filt_exp, x_cat)
    # (N, S, 12S) -> (N, 12, S, S); channel index = filter_idx*3 + rgb_channel
    return fea_cat.reshape(N, S, 4 * C, S).transpose(0, 2, 1, 3)


# ----------------------------------------------------------------------------
# Kernel 2: fused conv1-stem matmul + 32->2048 projection + ReLU +
#           adaptive-avg-pool accumulation + fc.  Grid = (batch, P tiles).
# ----------------------------------------------------------------------------
def stem_head_kernel(patch_ref, wc_ref, wp_ref, wfc_ref, bfc_ref,
                     y_ref, f_ref, acc_ref, *, inv_p):
    pt = pl.program_id(1)

    @pl.when(pt == 0)
    def _():
        acc_ref[...] = jnp.zeros_like(acc_ref)

    # (TP, 128) @ (128, 128) -> stem; zero-padded K rows / Cout cols contribute 0.
    stem = jnp.dot(patch_ref[0], wc_ref[...], preferred_element_type=jnp.float32)
    # (TP, 128) @ (128, 2048) -> features; ReLU then running sum for the pool.
    h = jnp.maximum(
        jnp.dot(stem, wp_ref[...], preferred_element_type=jnp.float32), 0.0)
    acc_ref[...] += jnp.sum(h, axis=0, keepdims=True)          # (1, F)

    @pl.when(pt == pl.num_programs(1) - 1)
    def _():
        ym = acc_ref[...] * inv_p                              # mean over true P
        y_ref[...] = ym
        # fc as VPU multiply + lane reduce (avoid a 1x1 MXU matmul).
        f_ref[...] = (jnp.sum(ym * wfc_ref[...], axis=1, keepdims=True)
                      + bfc_ref[0, 0])


def stem_head(patches, wc_pad, wp_pad, wfc_row, bfc, *, true_p, tp):
    N, Pp, Kp = patches.shape
    Cp, F = wp_pad.shape
    nt = Pp // tp
    kern = functools.partial(stem_head_kernel, inv_p=1.0 / float(true_p))
    return pl.pallas_call(
        kern,
        out_shape=(jax.ShapeDtypeStruct((N, F), jnp.float32),
                   jax.ShapeDtypeStruct((N, 1), jnp.float32)),
        grid=(N, nt),
        in_specs=[
            pl.BlockSpec((1, tp, Kp), lambda n, t: (n, t, 0)),
            pl.BlockSpec((Kp, Cp), lambda n, t: (0, 0)),
            pl.BlockSpec((Cp, F), lambda n, t: (0, 0)),
            pl.BlockSpec((1, F), lambda n, t: (0, 0)),
            pl.BlockSpec(memory_space=pltpu.MemorySpace.SMEM),
        ],
        out_specs=(pl.BlockSpec((1, F), lambda n, t: (n, 0)),
                   pl.BlockSpec((1, 1), lambda n, t: (n, 0))),
        scratch_shapes=[pltpu.VMEM((1, F), jnp.float32)],
        compiler_params=pltpu.CompilerParams(
            dimension_semantics=("parallel", "arbitrary"),
            vmem_limit_bytes=32 * 1024 * 1024),
    )(patches, wc_pad, wp_pad, wfc_row, bfc)


# ----------------------------------------------------------------------------
# im2col for Conv2d(12, 32, 3, stride=2, pad=0, bias=False)  (XLA glue).
# TODO(synk): at real 299x299 resolution, gather the 3x3/stride-2 patches
# inside the kernel instead of materializing the 9x-expanded tensor in HBM.
# ----------------------------------------------------------------------------
def im2col_stride2(fea, kh=3, kw=3, stride=2):
    N, Cin, H, W = fea.shape
    Ho = (H - kh) // stride + 1
    Wo = (W - kw) // stride + 1
    cols = []
    for i in range(kh):
        for j in range(kw):
            cols.append(fea[:, :, i:i + stride * Ho:stride, j:j + stride * Wo:stride])
    p = jnp.stack(cols, axis=2)                           # (N, Cin, kh*kw, Ho, Wo)
    p = p.transpose(0, 3, 4, 1, 2).reshape(N, Ho * Wo, Cin * kh * kw)
    return p, Ho * Wo


# ----------------------------------------------------------------------------
# F3Net forward (mode='FAD').
# ----------------------------------------------------------------------------
def f3net_forward(x, params, *, tp=256):
    N, C, S, _ = x.shape
    # Precompute filt = base + 2*sigmoid(learn) - 1 once (parameter-only work).
    filt = params['base'] + 2.0 * jax.nn.sigmoid(params['learn']) - 1.0
    fea = fad_head(x, params['D'], params['DT'], filt)        # (N, 12, S, S)

    patches, P = im2col_stride2(fea)                          # (N, P, 108)
    Kc = patches.shape[-1]
    Kp, Cp = 128, 128
    tp_eff = round_up(min(tp, round_up(P, 8)), 8)
    Pp = round_up(P, tp_eff)
    # Zero-pad K -> 128 and P -> multiple of the tile; zero rows/cols contribute
    # nothing to the matmuls or to the post-ReLU pooled sum.
    patches = jnp.pad(patches, ((0, 0), (0, Pp - P), (0, Kp - Kc)))

    Cout = params['conv1_w'].shape[0]
    F = params['wp'].shape[1]
    wc = params['conv1_w'].reshape(Cout, Kc).T                # (108, 32)
    wc_pad = jnp.zeros((Kp, Cp), jnp.float32).at[:Kc, :Cout].set(wc)
    wp_pad = jnp.zeros((Cp, F), jnp.float32).at[:Cout, :].set(params['wp'])
    wfc_row = params['wfc'].reshape(1, F)
    bfc = params['bfc'].reshape(1, 1)

    # TODO(synk): dropout (p=0.2) treated as inference-mode identity.
    y, f = stem_head(patches, wc_pad, wp_pad, wfc_row, bfc, true_p=P, tp=tp_eff)
    return y, f, fea


# ----------------------------------------------------------------------------
# Pure-JAX references (sanity checks only).
# ----------------------------------------------------------------------------
def fad_head_ref(x, D, DT, base, learn):
    filt = base + 2.0 * jax.nn.sigmoid(learn) - 1.0            # (4,S,S)
    freq = jnp.einsum('ij,ncjk,kl->ncil', D, x, DT)
    xp = freq[:, None] * filt[None, :, None]                   # (N,4,C,S,S)
    y = jnp.einsum('ij,nfcjk,kl->nfcil', DT, xp, D)
    N, _, C, S, _ = y.shape
    return y.reshape(N, 4 * C, S, S)


def f3net_ref(x, params):
    fea = fad_head_ref(x, params['D'], params['DT'],
                       params['base'], params['learn'])
    stem = lax.conv_general_dilated(
        fea, params['conv1_w'], window_strides=(2, 2), padding='VALID',
        dimension_numbers=('NCHW', 'OIHW', 'NCHW'))            # (N,32,Ho,Wo)
    N, Cout = stem.shape[0], stem.shape[1]
    s2 = stem.reshape(N, Cout, -1).transpose(0, 2, 1)          # (N,P,32)
    h = jnp.maximum(jnp.einsum('npc,cf->npf', s2, params['wp']), 0.0)
    y = h.mean(axis=1)                                         # (N,F)
    f = y @ params['wfc'] + params['bfc'].reshape(1, 1)        # (N,1)
    return y, f, fea


if __name__ == "__main__":
    # Small-shape instance consistent with the module (img_width == img_height).
    N, C, S = 2, 3, 16        # batch=2, RGB, 16x16 "image"
    FEAT = 2048               # fc in_features for mode='FAD'

    key = jax.random.PRNGKey(0)
    kx, kl, kc, kp, kf = jax.random.split(key, 5)

    x = jax.random.normal(kx, (N, C, S, S), dtype=jnp.float32)

    # FAD head constants / parameters.
    D_np = dct_mat(S)
    bands = [(0, S // 2.82), (S // 2.82, S // 2), (S // 2, S * 2), (0, S * 2)]
    base_np = np.stack([generate_filter(b0, b1, S) for (b0, b1) in bands])  # (4,S,S)

    params = {
        'D': jnp.asarray(D_np),
        'DT': jnp.asarray(D_np.T),
        'base': jnp.asarray(base_np),
        'learn': 0.1 * jax.random.normal(kl, (4, S, S), dtype=jnp.float32),
        # Xception conv1 replacement: Conv2d(12, 32, 3, 2, 0, bias=False)
        'conv1_w': 0.1 * jax.random.normal(kc, (32, 12, 3, 3), dtype=jnp.float32),
        # Stub for the Xception body: pointwise projection 32 -> 2048
        'wp': jax.random.normal(kp, (32, FEAT), dtype=jnp.float32) / np.sqrt(32.0),
        # fc = nn.Linear(2048, 1)
        'wfc': jax.random.normal(kf, (FEAT, 1), dtype=jnp.float32) / np.sqrt(FEAT),
        'bfc': jnp.zeros((1, 1), dtype=jnp.float32),
    }

    # tp=32 -> P=49 pads to 64 and exercises the 2-tile pool accumulation path.
    y, f, fea = f3net_forward(x, params, tp=32)
    jax.block_until_ready((y, f, fea))

    # Sanity checks against the pure-JAX references.
    y_ref, f_ref, fea_ref = f3net_ref(x, params)
    assert fea.shape == (N, 12, S, S)
    assert y.shape == (N, FEAT) and f.shape == (N, 1)
    assert np.allclose(np.asarray(fea), np.asarray(fea_ref), rtol=1e-3, atol=1e-3)
    assert np.allclose(np.asarray(y), np.asarray(y_ref), rtol=1e-3, atol=1e-3)
    assert np.allclose(np.asarray(f), np.asarray(f_ref), rtol=1e-3, atol=1e-3)

    print("KERNEL_OK")
</pallas_src>

<mosaic_0001>
module attributes {stable_mosaic.version = 11 : i64} {
  func.func @fad_head_kernel(%arg0: i32, %arg1: memref<16x16xf32, #tpu.memory_space<vmem>>, %arg2: memref<16x16xf32, #tpu.memory_space<vmem>>, %arg3: memref<48x48xf32, #tpu.memory_space<vmem>>, %arg4: memref<192x192xf32, #tpu.memory_space<vmem>>, %arg5: memref<16x192xf32, #tpu.memory_space<vmem>>, %arg6: memref<1x16x48xf32, #tpu.memory_space<vmem>>, %arg7: memref<1x16x192xf32, #tpu.memory_space<vmem>>) attributes {dimension_semantics = [#tpu.dimension_semantics<parallel>], iteration_bounds = array<i64: 2>, scalar_prefetch = 0 : i64, scratch_operands = 0 : i64, tpu.core_type = #tpu.core_type<tc>, window_params = [{pipeline_mode = #tpu.pipeline_mode<synchronous>, transform_indices = @transform_0, window_bounds = array<i64: 16, 16>}, {pipeline_mode = #tpu.pipeline_mode<synchronous>, transform_indices = @transform_1, window_bounds = array<i64: 16, 16>}, {pipeline_mode = #tpu.pipeline_mode<synchronous>, transform_indices = @transform_2, window_bounds = array<i64: 48, 48>}, {pipeline_mode = #tpu.pipeline_mode<synchronous>, transform_indices = @transform_3, window_bounds = array<i64: 192, 192>}, {pipeline_mode = #tpu.pipeline_mode<synchronous>, transform_indices = @transform_4, window_bounds = array<i64: 16, 192>}, {transform_indices = @transform_5, window_bounds = array<i64: 1, 16, 48>}, {transform_indices = @transform_6, window_bounds = array<i64: 1, 16, 192>}]} {
    %c0 = arith.constant 0 : index
    %c0_0 = arith.constant 0 : index
    %0 = vector.load %arg1[%c0, %c0_0] : memref<16x16xf32, #tpu.memory_space<vmem>>, vector<16x16xf32>
    %c0_1 = arith.constant 0 : index
    %c0_2 = arith.constant 0 : index
    %c0_3 = arith.constant 0 : index
    %1 = vector.load %arg6[%c0_1, %c0_2, %c0_3] : memref<1x16x48xf32, #tpu.memory_space<vmem>>, vector<1x16x48xf32>
    %2 = vector.shape_cast %1 : vector<1x16x48xf32> to vector<16x48xf32>
    %cst = arith.constant dense<0.000000e+00> : vector<16x48xf32>
    %3 = tpu.matmul %0, %2, %cst {dimension_numbers = #tpu.dot_dimension_numbers<[1], [0], [0], [1], [0, 0, 1, 1], [], []>} : vector<16x16xf32>, vector<16x48xf32>, vector<16x48xf32> -> vector<16x48xf32>
    %c0_4 = arith.constant 0 : index
    %c0_5 = arith.constant 0 : index
    %4 = vector.load %arg3[%c0_4, %c0_5] : memref<48x48xf32, #tpu.memory_space<vmem>>, vector<48x48xf32>
    %cst_6 = arith.constant dense<0.000000e+00> : vector<16x48xf32>
    %5 = tpu.matmul %3, %4, %cst_6 {dimension_numbers = #tpu.dot_dimension_numbers<[1], [0], [0], [1], [0, 0, 1, 1], [], []>} : vector<16x48xf32>, vector<48x48xf32>, vector<16x48xf32> -> vector<16x48xf32>
    %6 = tpu.concatenate %5, %5, %5, %5 in 1 : vector<16x48xf32>, vector<16x48xf32>, vector<16x48xf32>, vector<16x48xf32> -> vector<16x192xf32>
    %c0_7 = arith.constant 0 : index
    %c0_8 = arith.constant 0 : index
    %7 = vector.load %arg5[%c0_7, %c0_8] : memref<16x192xf32, #tpu.memory_space<vmem>>, vector<16x192xf32>
    %8 = arith.mulf %6, %7 : vector<16x192xf32>
    %c0_9 = arith.constant 0 : index
    %c0_10 = arith.constant 0 : index
    %9 = vector.load %arg2[%c0_9, %c0_10] : memref<16x16xf32, #tpu.memory_space<vmem>>, vector<16x16xf32>
    %cst_11 = arith.constant dense<0.000000e+00> : vector<16x192xf32>
    %10 = tpu.matmul %9, %8, %cst_11 {dimension_numbers = #tpu.dot_dimension_numbers<[1], [0], [0], [1], [0, 0, 1, 1], [], []>} : vector<16x16xf32>, vector<16x192xf32>, vector<16x192xf32> -> vector<16x192xf32>
    %c0_12 = arith.constant 0 : index
    %c0_13 = arith.constant 0 : index
    %11 = vector.load %arg4[%c0_12, %c0_13] : memref<192x192xf32, #tpu.memory_space<vmem>>, vector<192x192xf32>
    %cst_14 = arith.constant dense<0.000000e+00> : vector<16x192xf32>
    %12 = tpu.matmul %10, %11, %cst_14 {dimension_numbers = #tpu.dot_dimension_numbers<[1], [0], [0], [1], [0, 0, 1, 1], [], []>} : vector<16x192xf32>, vector<192x192xf32>, vector<16x192xf32> -> vector<16x192xf32>
    %c0_15 = arith.constant 0 : index
    %c0_16 = arith.constant 0 : index
    %c0_17 = arith.constant 0 : index
    %13 = vector.load %arg7[%c0_15, %c0_16, %c0_17] : memref<1x16x192xf32, #tpu.memory_space<vmem>>, vector<1x16x192xf32>
    %14 = vector.shape_cast %13 : vector<1x16x192xf32> to vector<16x192xf32>
    %15 = vector.shape_cast %12 : vector<16x192xf32> to vector<1x16x192xf32>
    tpu.vector_store %arg7[%c0_15, %c0_16, %c0_17], %15 {strides = array<i32>} : memref<1x16x192xf32, #tpu.memory_space<vmem>>, vector<1x16x192xf32>,
    return
  }
  func.func @transform_0(%arg0: i32) -> (i32, i32) {
    %c0_i32 = arith.constant 0 : i32
    %c0_i32_0 = arith.constant 0 : i32
    %c0_i32_1 = arith.constant 0 : i32
    return %c0_i32, %c0_i32_0 : i32, i32
  }
  func.func @transform_1(%arg0: i32) -> (i32, i32) {
    %c0_i32 = arith.constant 0 : i32
    %c0_i32_0 = arith.constant 0 : i32
    %c0_i32_1 = arith.constant 0 : i32
    return %c0_i32, %c0_i32_0 : i32, i32
  }
  func.func @transform_2(%arg0: i32) -> (i32, i32) {
    %c0_i32 = arith.constant 0 : i32
    %c0_i32_0 = arith.constant 0 : i32
    %c0_i32_1 = arith.constant 0 : i32
    return %c0_i32, %c0_i32_0 : i32, i32
  }
  func.func @transform_3(%arg0: i32) -> (i32, i32) {
    %c0_i32 = arith.constant 0 : i32
    %c0_i32_0 = arith.constant 0 : i32
    %c0_i32_1 = arith.constant 0 : i32
    return %c0_i32, %c0_i32_0 : i32, i32
  }
  func.func @transform_4(%arg0: i32) -> (i32, i32) {
    %c0_i32 = arith.constant 0 : i32
    %c0_i32_0 = arith.constant 0 : i32
    %c0_i32_1 = arith.constant 0 : i32
    return %c0_i32, %c0_i32_0 : i32, i32
  }
  func.func @transform_5(%arg0: i32) -> (i32, i32, i32) {
    %c0_i32 = arith.constant 0 : i32
    %c0_i32_0 = arith.constant 0 : i32
    %c0_i32_1 = arith.constant 0 : i32
    return %arg0, %c0_i32, %c0_i32_0 : i32, i32, i32
  }
  func.func @transform_6(%arg0: i32) -> (i32, i32, i32) {
    %c0_i32 = arith.constant 0 : i32
    %c0_i32_0 = arith.constant 0 : i32
    %c0_i32_1 = arith.constant 0 : i32
    return %arg0, %c0_i32, %c0_i32_0 : i32, i32, i32
  }
}

</mosaic_0001>

<bundles_post_ra>
// kernel: tpu_custom_call.1
= control target key start
LH: loop header
LB: loop body
LE: loop exit
PB: predicated region body
PF: predicated region fallthrough
CT: control target
= control target key end

     0   :  { %11 = vsyncpa [#allocation3], 0  ;;  %s1800_s0 = inlined_call_operand.hbm [shape: f32[16,16], index: 0, kind: input, shape index: {}]   ;;  %s1801_s1 = inlined_call_operand.hbm [shape: f32[16,16], index: 1, kind: input, shape index: {}]   ;;  %s1802_s2 = inlined_call_operand.hbm [shape: f32[48,48], index: 2, kind: input, shape index: {}]   ;;  %s1803_s3 = inlined_call_operand.hbm [shape: f32[192,192], index: 3, kind: input, shape index: {}]   ;;  %s1804_s4 = inlined_call_operand.hbm [shape: f32[16,192], index: 4, kind: input, shape index: {}]   ;;  %s1805_s5 = inlined_call_operand.hbm [shape: f32[2,16,48], index: 5, kind: input, shape index: {}]   ;;  %s1806_s6 = inlined_call_operand.hbm [shape: f32[2,16,192], index: 6, kind: output, shape index: {}]  }
   0x1   :  { %12 = vsyncpa [#allocation6], 0 }
   0x2   :  { %13 = vsyncpa [#allocation9], 0 }
   0x3   :  { %14 = vsyncpa [#allocation12], 0 }
   0x4   :  { %16 = vsyncpa [#allocation12 + $0x1], 0 }
   0x5   :  { %17 = vsyncpa [#allocation4], 0 }
   0x6   :  { %19 = vsyncpa [#allocation4 + $0x1], 0  ;;  %s1453_s21 = smov 0   ;;  %s1455_s22 = smov 0  }
   0x7   :  { %s1457_s23 = smov 0   ;;  %s1459_s24 = smov 0  }
   0x8 LB: > { %s1474_s25 = sadd.s32 4294967295, %s1400_s24   ;;  %p911_p0 = scmp.ge.s32.totalorder %s1400_s24, 1  ;;  %s1400_s24 = sphi %s1459_s24, %s1833_s24   ;;  %s1396_s23 = sphi %s1457_s23, %s1832_s23   ;;  %s1392_s22 = sphi %s1455_s22, %s1831_s22   ;;  %s1388_s21 = sphi %s1453_s21, %s1830_s21  }
   0x9   : > { %p1807_p1 = scmp.eq.s32.totalorder %s1474_s25, 0  ;;  %p187_p2 = scmp.lt.s32.totalorder %s1400_s24, 3 }
   0xa   : > { %s1402_s27 = smov [#allocation5]   ;;  %s1403_s29 = smov [#allocation8]  }
   0xb   : > { %p1479_p3 = pnand %p911_p0, %p187_p2  ;;  %s212_s28 = sshll.u32 %s1402_s27, 4  ;;  %s1483_s28 = int_to_ptr.vmem [resolvable:$true] %s212_s28 }
   0xc   : > { %s238_s30 = sshll.u32 %s1403_s29, 4  ;;  %s1404_s8 = smov [#allocation2]   ;;  %s1494_s30 = int_to_ptr.vmem [resolvable:$true] %s238_s30 }
   0xd   : > { %s1811_s26 = scalar_select %p1479_p3, 1, 0 }
   0xe   : > { %p1070_p5 = pneg %p1479_p3  ;;  %s1496_s9 = sshll.u32 %s1404_s8, 4  ;;  %s200_s9 = int_to_ptr.vmem [resolvable:$true] %s1496_s9 }
   0xf   : > { %s1152_s12 = scalar_lea.hbm %s1801_s1, 256 }
  0x10   : > { %p1490_p6 = pnand %p1070_p5, %p1807_p1  ;;  %p1153_p7 = scmp.ne.s32.totalorder %s1801_s1, %s1152_s12 }
  0x11   : > { %p1159_p11 = scmp.lt.u32.totalorder %s1152_s12, %s1801_s1 }
  0x12   : > { %p1506_p8 = pneg %p1490_p6 }
  0x14   : > { %p1155_p9 = pnand %p1506_p8, %p1153_p7 }
  0x16   : > { %p1156_p10 = pneg %p1155_p9 }
  0x18   : > { %p1161_p12 = pnand %p1159_p11, %p1156_p10 }
  0x1a   : > { %1164 = shalt.err (!%p1161_p12)
}
  0x1b   : > { %s1165_s18 = scalar_lea.vmem %s1483_s28, 256  ;;  %p1173_p5 = scmp.lt.s32.totalorder %s1483_s28, %s1483_s28 }
  0x1c   : > { %p1166_p13 = scmp.ne.s32.totalorder %s1483_s28, %s1165_s18  ;;  %p1174_p4 = scmp.lt.s32.totalorder %s1165_s18, %s1165_s18 }
  0x1e   : > { %p1168_p0 = pnand %p1166_p13, %p1506_p8  ;;  %p1175_p7 = por %p1174_p4, %p1173_p5 }
  0x20   : > { %p1169_p2 = pneg %p1168_p0 }
  0x22   : > { %p1176_p9 = pnand %p1175_p7, %p1169_p2 }
  0x24   : > { %1179 = shalt.err (!%p1176_p9)
}
  0x25   : > { %s1405_s19 = smov 128   ;;  %s1406_s20 = smov 8  }
  0x26   : > { %1076 = dma.hbm_to_vmem [thread:$0]  (!%p1490_p6), %s1801_s1, 256, %s1483_s28, [#allocation6], %s1405_s19, %s1405_s19, %s1406_s20  }
  0x27   : > { %s1180_s11 = scalar_lea.hbm %s1803_s3, 6144 }
  0x28   : > { %p1181_p4 = scmp.ne.s32.totalorder %s1803_s3, %s1180_s11  ;;  %p1187_p12 = scmp.lt.u32.totalorder %s1180_s11, %s1803_s3 }
  0x2a   : > { %p1183_p10 = pnand %p1181_p4, %p1506_p8 }
  0x2c   : > { %p1184_p11 = pneg %p1183_p10 }
  0x2e   : > { %p1189_p13 = pnand %p1187_p12, %p1184_p11 }
  0x30   : > { %1192 = shalt.err (!%p1189_p13)
}
  0x31   : > { %s1193_s28 = scalar_lea.vmem %s1494_s30, 6144  ;;  %p1201_p7 = scmp.lt.s32.totalorder %s1494_s30, %s1494_s30 }
  0x32   : > { %p1194_p0 = scmp.ne.s32.totalorder %s1494_s30, %s1193_s28  ;;  %p1202_p9 = scmp.lt.s32.totalorder %s1193_s28, %s1193_s28 }
  0x34   : > { %p1196_p2 = pnand %p1194_p0, %p1506_p8  ;;  %p1203_p4 = por %p1202_p9, %p1201_p7 }
  0x36   : > { %p1197_p5 = pneg %p1196_p2 }
  0x38   : > { %p1204_p10 = pnand %p1203_p4, %p1197_p5 }
  0x3a   : > { %1207 = shalt.err (!%p1204_p10)
}
  0x3b   : > { %s1809_s17 = smov 256   ;;  %s1408_s18 = smov 16  }
  0x3c   : > { %1082 = dma.hbm_to_vmem [thread:$0]  (!%p1490_p6), %s1803_s3, 6144, %s1494_s30, [#allocation9], %s1809_s17, %s1809_s17, %s1408_s18  }
  0x3d   : > { %s1208_s11 = scalar_lea.hbm %s1800_s0, 256 }
  0x3e   : > { %p1209_p11 = scmp.ne.s32.totalorder %s1800_s0, %s1208_s11  ;;  %p1215_p0 = scmp.lt.u32.totalorder %s1208_s11, %s1800_s0 }
  0x40   : > { %p1211_p12 = pnand %p1209_p11, %p1506_p8 }
  0x42   : > { %p1212_p13 = pneg %p1211_p12 }
  0x44   : > { %p1217_p2 = pnand %p1215_p0, %p1212_p13 }
  0x46   : > { %1220 = shalt.err (!%p1217_p2)
}
  0x47   : > { %s1221_s28 = scalar_lea.vmem %s200_s9, 256  ;;  %p1229_p4 = scmp.lt.s32.totalorder %s200_s9, %s200_s9 }
  0x48   : > { %p1222_p5 = scmp.ne.s32.totalorder %s200_s9, %s1221_s28  ;;  %p1230_p10 = scmp.lt.s32.totalorder %s1221_s28, %s1221_s28 }
  0x4a   : > { %p1224_p7 = pnand %p1222_p5, %p1506_p8  ;;  %p1231_p1 = por %p1230_p10, %p1229_p4 }
  0x4c   : > { %p1225_p9 = pneg %p1224_p7 }
  0x4e   : > { %p1232_p3 = pnand %p1231_p1, %p1225_p9 }
  0x50   : > { %1235 = shalt.err (!%p1232_p3)
}
  0x51   : > { %1073 = dma.hbm_to_vmem [thread:$0]  (!%p1490_p6), %s1800_s0, 256, %s200_s9, [#allocation3], %s1405_s19, %s1405_s19, %s1406_s20  }
  0x52   : > { %s1409_s29 = smov [#allocation7]   ;;  %s1410_s10 = smov [#allocation10]  }
  0x53   : > { %s225_s8 = sshll.u32 %s1409_s29, 4  ;;  %s251_s11 = sshll.u32 %s1410_s10, 4  ;;  %s226_s8 = int_to_ptr.vmem [resolvable:$true] %s225_s8  ;;  %s252_s11 = int_to_ptr.vmem [resolvable:$true] %s251_s11 }
  0x54   : > { %s1236_s14 = scalar_lea.hbm %s1802_s2, 768 }
  0x55   : > { %p1237_p1 = scmp.ne.s32.totalorder %s1802_s2, %s1236_s14  ;;  %p1243_p12 = scmp.lt.u32.totalorder %s1236_s14, %s1802_s2 }
  0x57   : > { %p1239_p3 = pnand %p1237_p1, %p1506_p8 }
  0x59   : > { %p1240_p11 = pneg %p1239_p3 }
  0x5b   : > { %p1245_p13 = pnand %p1243_p12, %p1240_p11 }
  0x5d   : > { %1248 = shalt.err (!%p1245_p13)
}
  0x5e   : > { %s1249_s9 = scalar_lea.vmem %s226_s8, 768  ;;  %p1257_p7 = scmp.lt.s32.totalorder %s226_s8, %s226_s8 }
  0x5f   : > { %p1250_p0 = scmp.ne.s32.totalorder %s226_s8, %s1249_s9  ;;  %p1258_p9 = scmp.lt.s32.totalorder %s1249_s9, %s1249_s9 }
  0x61   : > { %p1252_p2 = pnand %p1250_p0, %p1506_p8  ;;  %p1259_p4 = por %p1258_p9, %p1257_p7 }
  0x63   : > { %p1253_p5 = pneg %p1252_p2 }
  0x65   : > { %p1260_p10 = pnand %p1259_p4, %p1253_p5 }
  0x67   : > { %1263 = shalt.err (!%p1260_p10)
}
  0x68   : > { %1079 = dma.hbm_to_vmem [thread:$0]  (!%p1490_p6), %s1802_s2, 768, %s226_s8, [#allocation6], %s1405_s19, %s1405_s19, %s1406_s20  }
  0x69   : > { %s1264_s12 = scalar_lea.hbm %s1804_s4, 512 }
  0x6a   : > { %p1265_p1 = scmp.ne.s32.totalorder %s1804_s4, %s1264_s12  ;;  %p1271_p12 = scmp.lt.u32.totalorder %s1264_s12, %s1804_s4 }
  0x6c   : > { %p1267_p3 = pnand %p1265_p1, %p1506_p8 }
  0x6e   : > { %p1268_p11 = pneg %p1267_p3 }
  0x70   : > { %p1273_p13 = pnand %p1271_p12, %p1268_p11 }
  0x72   : > { %1276 = shalt.err (!%p1273_p13)
}
  0x73   : > { %s1277_s30 = scalar_lea.vmem %s252_s11, 512  ;;  %p1285_p7 = scmp.lt.s32.totalorder %s252_s11, %s252_s11 }
  0x74   : > { %p1278_p0 = scmp.ne.s32.totalorder %s252_s11, %s1277_s30  ;;  %p1286_p9 = scmp.lt.s32.totalorder %s1277_s30, %s1277_s30 }
  0x76   : > { %p1280_p2 = pnand %p1278_p0, %p1506_p8  ;;  %p1287_p4 = por %p1286_p9, %p1285_p7 }
  0x78   : > { %p1281_p5 = pneg %p1280_p2 }
  0x7a   : > { %p1288_p10 = pnand %p1287_p4, %p1281_p5 }
  0x7c   : > { %1291 = shalt.err (!%p1288_p10)
}
  0x7d   : > { %s1814_s8 = smov 256   ;;  %s910_s7 = sadd.s32 4294967294, %s1400_s24  }
  0x7e   : > { %1085 = dma.hbm_to_vmem [thread:$0]  (!%p1490_p6), %s1804_s4, 512, %s252_s11, [#allocation9], %s1814_s8, %s1814_s8, %s1408_s18  }
  0x7f   : > { %s1622_s15 = sadd.s32 1, %s1400_s24   ;;  %s137_s27 = sadd.s32 1, %s1396_s23 }
  0x80   : > { %s134_s29 = ssub.s32 %s1400_s24, %s1622_s15  ;;  %p144_p8 = scmp.ne.s32.totalorder %s1396_s23, %s1392_s22 }
  0x81   : > { %p135_p1 = scmp.eq.s32.totalorder %s134_s29, 0  ;;  %p145_p3 = scmp.eq.s32.totalorder %s1400_s24, 0 }
  0x82   : > { %p150_p11 = scmp.ne.s32.totalorder %s1392_s22, %s1388_s21  ;;  %p174_p12 = scmp.eq.s32.totalorder %s1474_s25, 1 }
  0x83   : > { %s1634_s10 = scalar_select %p135_p1, %s1396_s23, %s137_s27  }
  0x84   : > { %p146_p13 = por %p145_p3, %p144_p8  ;;  %p1815_p0 = scmp.eq.s32.totalorder %s1474_s25, 0 }
  0x85   : > { %p1642_p6 = por %p174_p12, %p144_p8  ;;  %p180_p5 = scmp.eq.s32.totalorder %s910_s7, 1 }
  0x86   : > { %p1638_p2 = por %p1815_p0, %p150_p11  ;;  %p1099_p7 = scmp.lt.s32.totalorder %s1400_s24, 2 }
  0x87   : > { %s1817_s18 = scalar_select %p1642_p6, 1, 0 }
  0x88   : > { %s265_s11 = sand.u32 1, %s1396_s23   ;;  %p1648_p9 = por %p180_p5, %p150_p11 }
  0x89   : > { %s918_s14 = sshll.u32 %s265_s11, 4  ;;  %s942_s16 = sshll.u32 %s1400_s24, 8 }
  0x8a   : > { %s1818_s13 = scalar_select %p1648_p9, 1, 0 }
  0x8b   : > { %s1656_s8 = scalar_lea.hbm %s1805_s5, %s942_s16  ;;  %s269_s9 = scalar_lea.vmem [#allocation11], %s918_s14 }
  0x8c   : > { %s276_s17 = sshll.u32 %s269_s9, 4  ;;  %p1658_p4 = pnand %p1099_p7, %p146_p13  ;;  %s1662_s17 = int_to_ptr.vmem [resolvable:$true] %s276_s17 }
  0x8d   : > { %s1664_s27 = scalar_lea.sflag [#allocation12], %s265_s11  ;;  %s1292_s29 = scalar_lea.hbm %s1656_s8, 256 }
  0x8e   : > { %p1293_p10 = scmp.ne.s32.totalorder %s1656_s8, %s1292_s29  ;;  %p1294_p8 = pneg %p1658_p4 }
  0x8f   : > { %s1297_s28 = scalar_lea.hbm %s1805_s5, 512  ;;  %p1298_p11 = scmp.lt.u32.totalorder %s1656_s8, %s1805_s5 }
  0x90   : > { %p1295_p1 = pnand %p1294_p8, %p1293_p10  ;;  %p1299_p12 = scmp.lt.u32.totalorder %s1297_s28, %s1292_s29 }
  0x91   : > { %p1301_p0 = scmp.lt.u32.totalorder %s1292_s29, %s1656_s8 }
  0x92   : > { %p1296_p3 = pneg %p1295_p1  ;;  %p1300_p13 = por %p1299_p12, %p1298_p11 }
  0x94   : > { %p1302_p5 = por %p1301_p0, %p1300_p13 }
  0x96   : > { %p1303_p7 = pnand %p1302_p5, %p1296_p3 }
  0x98   : > { %1306 = shalt.err (!%p1303_p7)
}
  0x99   : > { %s1307_s11 = scalar_lea.vmem %s1662_s17, 256  ;;  %s1411_s14 = smov [#allocation11]  }
  0x9a   : > { %p1308_p10 = scmp.ne.s32.totalorder %s1662_s17, %s1307_s11  ;;  %s1312_s16 = sshll.u32 %s1411_s14, 4  ;;  %s1313_s16 = int_to_ptr.vmem [resolvable:$false] %s1312_s16 }
  0x9b   : > { %s1314_s30 = scalar_lea.vmem %s1313_s16, 512  ;;  %p1315_p6 = scmp.lt.s32.totalorder %s1662_s17, %s1313_s16 }
  0x9c   : > { %p1310_p1 = pnand %p1308_p10, %p1294_p8  ;;  %p1316_p11 = scmp.lt.s32.totalorder %s1314_s30, %s1307_s11 }
  0x9e   : > { %p1311_p9 = pneg %p1310_p1  ;;  %p1317_p12 = por %p1316_p11, %p1315_p6 }
  0xa0   : > { %p1318_p13 = pnand %p1317_p12, %p1311_p9 }
  0xa2   : > { %1321 = shalt.err (!%p1318_p13)
}
  0xa3   : > { %1089 = dma.hbm_to_vmem [thread:$0]  (!%p1658_p4), %s1656_s8, 256, %s1662_s17, %s1664_s27, %s1405_s19, %s1405_s19, %s1406_s20  }
  0xa4   : > { %p1820_p8 = scmp.ne.s32.totalorder %s1811_s26, 0 }
  0xa5   : > { %p1821_p3 = scmp.eq.s32.totalorder (!%p1820_p8), %s1474_s25, 0 }
  0xa6   : > { %288 = sbr.rel (%p1820_p8) target bundleno = 1196 (0x4ac), region = 44 }
  0xad   : > { %1367 = dma.done.wait (%p1821_p3), [#allocation3], 256   ;;  %p1822_p0 = pmov %p1821_p3 }
  0xaf   : > { %1369 = vsyncadd (%p1822_p0), [#allocation3], 4294967040  ;;  %p1823_p6 = pmov %p1822_p0 }
  0xb0   : > { %p1824_p9 = pmov %p1822_p0 }
  0xb1   : > { %1371 = dma.done.wait (%p1823_p6), [#allocation6], 1024  }
  0xb2   : > { %1373 = vsyncadd (%p1824_p9), [#allocation6], 4294966272  ;;  %p1825_p5 = pmov %p1822_p0 }
  0xb3   : > { %p1826_p4 = pmov %p1822_p0 }
  0xb4   : > { %1375 = dma.done.wait (%p1825_p5), [#allocation9], 6656  }
  0xb5   : > { %1377 = vsyncadd (%p1826_p4), [#allocation9], 4294960640  ;;  %s1710_s26 = sand.u32 1, %s1392_s22  }
  0xb6   : > { %s927_s19 = sshll.u32 %s1710_s26, 4  ;;  %s311_s20 = scalar_lea.sflag [#allocation12], %s1710_s26 }
  0xb7   : > { %s314_s8 = scalar_lea.vmem [#allocation11], %s927_s19 }
  0xb8   : > { %1379 = dma.done.wait (%p1638_p2), %s311_s20, 256  }
  0xb9   : > { %1381 = vsyncadd (%p1638_p2), %s311_s20, 4294967040  ;;  %vm347_vm0 = vcmask 130048   ;;  %v345_v0 = vld [vmem:[%s314_s8] sm:$0xff]  ;;  %v346_v1 = vld [vmem:[%s314_s8 + $0x8] sm:$0xff]  ;;  %vm435_vm1 = vcmask 392192   ;;  %s1412_s12 = smov 96  }
  0xba   : > { %v343_v2 = vld [vmem:[#allocation2] sm:$0xff]  ;;  %v978_v3 = vpack.c.bf16 %v346_v1, %v345_v0  ;;  %v430_v5 = vld [vmem:[#allocation7 + $0x8] sm:$0xff]  ;;  %v431_v7 = vld [vmem:[#allocation7 + $0x10] sm:$0xff]  ;;  %s1413_s17 = smov 48   ;;  %v1414_v18 = vmov 0.0   ;;  %s1415_s7 = smov 16  }
  0xbb   : > { %960 = vmatprep.mubr.msk.f32.mxu1 %vm347_vm0, %v343_v2  ;;  %v429_v4 = vld [vmem:[#allocation7] sm:$0xff]  ;;  %v432_v8 = vld [vmem:[#allocation7 + $0x18] sm:$0xff]  ;;  %v344_v9 = vld [vmem:[#allocation2 + $0x8] sm:$0xff]  ;;  %vm539_vm2 = vcmask 785408   ;;  %vm685_vm3 = vcmask 523264   ;;  %s928_s27 = sshll.u32 %s1710_s26, 5 }
  0xbc   : > { %v982_v6 = vpack.c.bf16 %v430_v5, %v429_v4  ;;  %979 = vmatprep.subr.bf16.mxu1 %v978_v3  ;;  %v986_v10 = vpack.c.bf16 %v432_v8, %v431_v7  ;;  %v433_v11 = vld [vmem:[#allocation7 + $0x20] sm:$0xff]  ;;  %v434_v12 = vld [vmem:[#allocation7 + $0x28] sm:$0xff]  ;;  %v638_v19 = vld [vmem:[#allocation8 + $0x8] sm:$0xff]  ;;  %s342_s29 = scalar_lea.vmem [#allocation13], %s928_s27  ;;  %s943_s9 = sshll.u32 %s1474_s25, 9 }
  0xbd   : > { %981 = vmatpush3.bf16.msra.mxu1 %v978_v3  ;;  %v990_v13 = vpack.c.bf16 %v434_v12, %v433_v11  ;;  %v640_v20 = vld [vmem:[#allocation8 + $0x18] sm:$0xff]  ;;  %v637_v21 = vld [vmem:[#allocation8] sm:$0xff]  ;;  %v639_v23 = vld [vmem:[#allocation8 + $0x10] sm:$0xff]  ;;  %s787_s28 = sshll.u32 %s342_s29, 4  ;;  %s1754_s16 = scalar_lea.hbm %s1806_s6, %s943_s9  ;;  %s1749_s28 = int_to_ptr.vmem [resolvable:$true] %s787_s28 }
  0xbe   : > { %983 = vmatprep.subr.bf16.mxu1 %v982_v6  ;;  %v998_v22 = vpack.c.bf16 %v640_v20, %v638_v19  ;;  %v642_v24 = vld [vmem:[#allocation8 + $0x28] sm:$0xff]  ;;  %v644_v25 = vld [vmem:[#allocation8 + $0x38] sm:$0xff]  ;;  %v1000_v26 = vpack.c.bf16 %v639_v23, %v637_v21  ;;  %v641_v28 = vld [vmem:[#allocation8 + $0x20] sm:$0xff]  ;;  %s774_s30 = scalar_lea.sflag [#allocation4], %s1710_s26  ;;  %s1322_s19 = scalar_lea.vmem %s1749_s28, 512 }
  0xbf   : > { %v1002_v27 = vpack.c.bf16 %v644_v25, %v642_v24  ;;  %v643_v29 = vld [vmem:[#allocation8 + $0x30] sm:$0xff]  ;;  %v646_v30 = vld [vmem:[#allocation8 + $0x48] sm:$0xff]  ;;  %v648_v31 = vld [vmem:[#allocation8 + $0x58] sm:$0xff]  ;;  %p1323_p2 = scmp.ne.s32.totalorder %s1749_s28, %s1322_s19  ;;  %p1827_p7 = scmp.ne.s32.totalorder %s1817_s18, 0 }
  0xc0   : > { %961 = vmatmul.mubr.msk.f32.vlgmr.msra.gmra.mrb[0].mxu1 %vm347_vm0, %v344_v9  ;;  %999 = vmatprep.subr.bf16.mxu0 %v998_v22  ;;  %v1004_v32 = vpack.c.bf16 %v643_v29, %v641_v28  ;;  %v1006_v33 = vpack.c.bf16 %v648_v31, %v646_v30  ;;  %v645_v34 = vld [vmem:[#allocation8 + $0x40] sm:$0xff]  ;;  %v647_v35 = vld [vmem:[#allocation8 + $0x50] sm:$0xff]  ;;  %v650_v36 = vld [vmem:[#allocation8 + $0x68] sm:$0xff]  ;;  %s1416_s25 = smov [#allocation13]  }
  0xc1   : > { %985 = vmatpush3.bf16.msra.mxu1 %v982_v6  ;;  %1001 = vmatpush1.bf16.msra.mxu0 %v1000_v26  ;;  %v652_v37 = vld [vmem:[#allocation8 + $0x78] sm:$0xff]  ;;  %v1008_v38 = vpack.c.bf16 %v647_v35, %v645_v34  ;;  %v649_v40 = vld [vmem:[#allocation8 + $0x60] sm:$0xff]  ;;  %v651_v41 = vld [vmem:[#allocation8 + $0x70] sm:$0xff]  ;;  %p1324_p10 = pnand %p1323_p2, %p1827_p7  ;;  %s1326_s20 = sshll.u32 %s1416_s25, 4  ;;  %s1327_s20 = int_to_ptr.vmem [resolvable:$false] %s1326_s20 }
  0xc2   : > { %987 = vmatprep.subr.bf16.mxu1 %v986_v10  ;;  %1003 = vmatprep.subr.bf16.mxu0 %v1002_v27  ;;  %v1010_v39 = vpack.c.bf16 %v652_v37, %v650_v36  ;;  %v654_v42 = vld [vmem:[#allocation8 + $0x88] sm:$0xff]  ;;  %v656_v43 = vld [vmem:[#allocation8 + $0x98] sm:$0xff]  ;;  %v1012_v44 = vpack.c.bf16 %v651_v41, %v649_v40  ;;  %v653_v46 = vld [vmem:[#allocation8 + $0x80] sm:$0xff]  ;;  %s1328_s8 = scalar_lea.vmem %s1327_s20, 1024  ;;  %p1329_p11 = scmp.lt.s32.totalorder %s1749_s28, %s1327_s20 }
  0xc3   : > { %v1014_v45 = vpack.c.bf16 %v656_v43, %v654_v42  ;;  %v655_v47 = vld [vmem:[#allocation8 + $0x90] sm:$0xff]  ;;  %v658_v48 = vld [vmem:[#allocation8 + $0xa8] sm:$0xff]  ;;  %v660_v49 = vld [vmem:[#allocation8 + $0xb8] sm:$0xff]  ;;  %p1325_p1 = pneg %p1324_p10  ;;  %p1330_p12 = scmp.lt.s32.totalorder %s1328_s8, %s1322_s19 }
  0xc4   : > { %v1016_v50 = vpack.c.bf16 %v655_v47, %v653_v46  ;;  %v1018_v51 = vpack.c.bf16 %v660_v49, %v658_v48  ;;  %v657_v52 = vld [vmem:[#allocation8 + $0xa0] sm:$0xff]  ;;  %v659_v53 = vld [vmem:[#allocation8 + $0xb0] sm:$0xff]  ;;  %v662_v54 = vld [vmem:[#allocation8 + $0xc8] sm:$0xff] }
  0xc5   : > { %989 = vmatpush3.bf16.msra.mxu1 %v986_v10  ;;  %1005 = vmatpush1.bf16.msra.mxu0 %v1004_v32  ;;  %v664_v55 = vld [vmem:[#allocation8 + $0xd8] sm:$0xff]  ;;  %v1020_v56 = vpack.c.bf16 %v659_v53, %v657_v52  ;;  %v661_v58 = vld [vmem:[#allocation8 + $0xc0] sm:$0xff]  ;;  %v663_v59 = vld [vmem:[#allocation8 + $0xd0] sm:$0xff]  ;;  %p1331_p13 = por %p1330_p12, %p1329_p11 }
  0xc6   : > { %991 = vmatprep.subr.bf16.mxu1 %v990_v13  ;;  %1007 = vmatprep.subr.bf16.mxu0 %v1006_v33  ;;  %v1022_v57 = vpack.c.bf16 %v664_v55, %v662_v54  ;;  %v666_v60 = vld [vmem:[#allocation8 + $0xe8] sm:$0xff]  ;;  %v668_v61 = vld [vmem:[#allocation8 + $0xf8] sm:$0xff]  ;;  %v1024_v62 = vpack.c.bf16 %v663_v59, %v661_v58  ;;  %v665_v0 = vld [vmem:[#allocation8 + $0xe0] sm:$0xff] }
  0xc7   : > { %v1026_v63 = vpack.c.bf16 %v668_v61, %v666_v60  ;;  %v667_v1 = vld [vmem:[#allocation8 + $0xf0] sm:$0xff]  ;;  %v670_v2 = vld [vmem:[#allocation8 + $0x108] sm:$0xff]  ;;  %v672_v3 = vld [vmem:[#allocation8 + $0x118] sm:$0xff]  ;;  %p1332_p8 = pnand %p1331_p13, %p1325_p1 }
  0xc8   : > { %v1028_v4 = vpack.c.bf16 %v667_v1, %v665_v0  ;;  %v1030_v5 = vpack.c.bf16 %v672_v3, %v670_v2  ;;  %v669_v6 = vld [vmem:[#allocation8 + $0x100] sm:$0xff]  ;;  %v671_v7 = vld [vmem:[#allocation8 + $0x110] sm:$0xff]  ;;  %v674_v8 = vld [vmem:[#allocation8 + $0x128] sm:$0xff] }
  0xc9   : > { %993 = vmatpush3.bf16.msra.mxu1 %v990_v13  ;;  %1009 = vmatpush1.bf16.msra.mxu0 %v1008_v38  ;;  %v676_v9 = vld [vmem:[#allocation8 + $0x138] sm:$0xff]  ;;  %v1032_v10 = vpack.c.bf16 %v671_v7, %v669_v6  ;;  %v673_v12 = vld [vmem:[#allocation8 + $0x120] sm:$0xff]  ;;  %v675_v13 = vld [vmem:[#allocation8 + $0x130] sm:$0xff] }
  0xca   : > { %1011 = vmatprep.subr.bf16.mxu0 %v1010_v39  ;;  %v1034_v11 = vpack.c.bf16 %v676_v9, %v674_v8  ;;  %v1036_v19 = vpack.c.bf16 %v675_v13, %v673_v12  ;;  %v677_v21 = vld [vmem:[#allocation8 + $0x140] sm:$0xff]  ;;  %v679_v22 = vld [vmem:[#allocation8 + $0x150] sm:$0xff]  ;;  %v682_v23 = vld [vmem:[#allocation8 + $0x168] sm:$0xff] }
  0xcb   : > { %v684_v24 = vld [vmem:[#allocation8 + $0x178] sm:$0xff]  ;;  %v1040_v25 = vpack.c.bf16 %v679_v22, %v677_v21  ;;  %v546_v30 = vld [vmem:[#allocation10 + $0x10] sm:$0xff]  ;;  %v544_v33 = vld [vmem:[#allocation10] sm:$0xff] }
  0xcc   : > { %v1042_v26 = vpack.c.bf16 %v684_v24, %v682_v23  ;;  %v547_v39 = vld [vmem:[#allocation10 + $0x18] sm:$0xff]  ;;  %v545_v40 = vld [vmem:[#allocation10 + $0x8] sm:$0xff]  ;;  %v552_v48 = vld [vmem:[#allocation5] sm:$0xff] }
  0xcd   : > { %1013 = vmatpush1.bf16.msra.mxu0 %v1012_v44  ;;  %v681_v49 = vld [vmem:[#allocation8 + $0x160] sm:$0xff] }
  0xce   : > { %1015 = vmatprep.subr.bf16.mxu0 %v1014_v45 }
  0xd1   : > { %1017 = vmatpush1.bf16.msra.mxu0 %v1016_v50  ;;  %v683_v50 = vld [vmem:[#allocation8 + $0x170] sm:$0xff] }
  0xd2   : > { %1019 = vmatprep.subr.bf16.mxu0 %v1018_v51  ;;  %v1044_v51 = vpack.c.bf16 %v683_v50, %v681_v49 }
  0xd5   : > { %1021 = vmatpush1.bf16.msra.mxu0 %v1020_v56 }
  0xd6   : > { %1023 = vmatprep.subr.bf16.mxu0 %v1022_v57 }
  0xd9   : > { %1025 = vmatpush1.bf16.msra.mxu0 %v1024_v62 }
  0xda   : > { %1027 = vmatprep.subr.bf16.mxu0 %v1026_v63 }
  0xdd   : > { %1029 = vmatpush1.bf16.msra.mxu0 %v1028_v4 }
  0xde   : > { %1031 = vmatprep.subr.bf16.mxu0 %v1030_v5 }
  0xe1   : > { %1033 = vmatpush1.bf16.msra.mxu0 %v1032_v10 }
  0xe2   : > { %1035 = vmatprep.subr.bf16.mxu0 %v1034_v11 }
  0xe5   : > { %1037 = vmatpush1.bf16.msra.mxu0 %v1036_v19 }
 0x193   : > { %v962_v14 = vpop.f32.mrb[0].mxu1 }
 0x194   : > { %v420_v15 = vpop.f32.mrb[1].mxu1 }
 0x195   : > { %975 = vmatprep.mubr.msk.f32.mxu1 %vm435_vm1, %v420_v15  ;;  %v680_v15 = vld [vmem:[#allocation8 + $0x158] sm:$0xff] }
 0x196   : > { %976 = vmatmul.mubr.msk.f32.vlgmr.msra.gmra.mrb[2].mxu1 %vm435_vm1, %v962_v14  ;;  %v678_v14 = vld [vmem:[#allocation8 + $0x148] sm:$0xff] }
 0x197   : > { %624 = vmatprep.mubr.f32.mxu1 %v1414_v18  ;;  %v1038_v20 = vpack.c.bf16 %v680_v15, %v678_v14 }
 0x199   : > { %1039 = vmatprep.subr.bf16.mxu0 %v1038_v20 }
 0x19a   : > { %1041 = vmatpush1.bf16.msra.mxu0 %v1040_v25 }
 0x19b   : > { %1043 = vmatprep.subr.bf16.mxu0 %v1042_v26 }
 0x19e   : > { %1045 = vmatpush1.bf16.msra.mxu0 %v1044_v51 }
 0x269   : > { %v1722_v16 = vpop.f32.mrb[2].mxu1 }
 0x26a   : > { %527 = vrot.lane.b32.xlu1 %v1722_v16, %s1412_s12  ;;  %521 = vrot.lane.b32.xlu0 %v1722_v16, %s1413_s17  ;;  %v1726_v17 = vpop.f32.mrb[3].mxu1 }
 0x26e   : > { %525 = vrot.lane.b32.xlu1 %v1726_v17, %s1412_s12  ;;  %519 = vrot.lane.b32.xlu0 %v1726_v17, %s1413_s17 }
 0x272   : > { %533 = vrot.lane.b32.xlu1 %v1722_v16, %s1415_s7  ;;  %531 = vrot.lane.b32.xlu0 %v1726_v17, %s1415_s7 }
 0x2dc   : > { %v528_v27 = vpop.permute.xlu1 %527  ;;  %v522_v28 = vpop.permute.xlu0 %521 }
 0x2dd   : > { %v538_v29 = vsel %vm435_vm1, %v1722_v16, %v522_v28 }
 0x2de   : > { %v541_v31 = vsel %vm539_vm2, %v538_v29, %v528_v27 }
 0x2df   : > { %v550_v37 = vmul.f32 %v546_v30, %v541_v31 }
 0x2e0   : > { %v526_v32 = vpop.permute.xlu1 %525  ;;  %v520_v34 = vpop.permute.xlu0 %519 }
 0x2e1   : > { %v537_v35 = vsel %vm435_vm1, %v1726_v17, %v520_v34  ;;  %v553_v17 = vld [vmem:[#allocation5 + $0x8] sm:$0xff] }
 0x2e2   : > { %v540_v36 = vsel %vm539_vm2, %v537_v35, %v526_v32 }
 0x2e3   : > { %v548_v38 = vmul.f32 %v544_v33, %v540_v36 }
 0x2e4   : > { %v534_v41 = vpop.permute.xlu1 %533  ;;  %v532_v42 = vpop.permute.xlu0 %531 }
 0x2e5   : > { %v996_v43 = vpack.c.bf16 %v550_v37, %v548_v38  ;;  %v543_v44 = vsel %vm347_vm0, %v528_v27, %v534_v41  ;;  %v542_v16 = vsel %vm347_vm0, %v526_v32, %v532_v42 }
 0x2e6   : > { %v551_v45 = vmul.f32 %v547_v39, %v543_v44  ;;  %v549_v46 = vmul.f32 %v545_v40, %v542_v16 }
 0x2e8   : > { %v994_v47 = vpack.c.bf16 %v551_v45, %v549_v46 }
 0x2ea   : > { %995 = vmatprep.subr.bf16.mxu1 %v994_v47 }
 0x2eb   : > { %997 = vmatpush1.bf16.msra.mxu1 %v996_v43 }
 0x2ee   : > { %933 = vmatmul.mubr.msk.f32.vlgmr.msra.gmra.mrb[4].mxu1 %vm347_vm0, %v552_v48 }
 0x2ef   : > { %630 = vmatprep.mubr.f32.mxu1 %v1414_v18 }
 0x2f2   : > { %934 = vmatmul.mubr.msk.f32.gmra.mrb[6].mxu1 %vm347_vm0, %v553_v17 }
 0x3c1   : > { %v626_v52 = vpop.f32.mrb[4].mxu1 }
 0x3c2   : > { %v628_v53 = vpop.f32.mrb[5].mxu1 }
 0x3c3   : > { %935 = vmatprep.mubr.msk.f32.mxu0 %vm685_vm3, %v628_v53 }
 0x3c4   : > { %757 = vmatmul.mubr.f32.vlgmr.msra.gmra.mrb[0].mxu0 %v626_v52 }
 0x3c5   : > { %v632_v54 = vpop.f32.mrb[6].mxu1 }
 0x3c6   : > { %v634_v55 = vpop.f32.mrb[7].mxu1 }
 0x3c7   : > { %936 = vmatprep.mubr.msk.f32.mxu0 %vm685_vm3, %v634_v55 }
 0x3c8   : > { %763 = vmatmul.mubr.f32.gmra.mrb[2].mxu0 %v632_v54 }
 0x497   : > { %v758_v18 = vpop.f32.mrb[0].mxu0 }
 0x498   : > { %769 = vst [vmem:[%s342_s29] sm:$0xff] %v758_v18  ;;  %v760_v56 = vpop.f32.mrb[1].mxu0 }
 0x499   : > { %770 = vst.msk [vmem:[%s342_s29 + $0x8] sm:$0xff] %vm685_vm3, %v760_v56 }
 0x49b   : > { %v764_v57 = vpop.f32.mrb[2].mxu0 }
 0x49c   : > { %771 = vst [vmem:[%s342_s29 + $0x10] sm:$0xff] %v764_v57  ;;  %v766_v58 = vpop.f32.mrb[3].mxu0 }
 0x49d   : > { %772 = vst.msk [vmem:[%s342_s29 + $0x18] sm:$0xff] %vm685_vm3, %v766_v58 }
 0x49e   : > { %1335 = shalt.err (!%p1332_p8)
}
 0x49f   : > { %s1336_s12 = scalar_lea.hbm %s1754_s16, 512  ;;  %s1340_s29 = scalar_lea.hbm %s1806_s6, 1024 }
 0x4a0   : > { %p1337_p3 = scmp.ne.s32.totalorder %s1754_s16, %s1336_s12  ;;  %p1341_p9 = scmp.lt.u32.totalorder %s1754_s16, %s1806_s6 }
 0x4a1   : > { %p1342_p5 = scmp.lt.u32.totalorder %s1340_s29, %s1336_s12  ;;  %p1344_p2 = scmp.lt.u32.totalorder %s1336_s12, %s1754_s16 }
 0x4a2   : > { %p1338_p0 = pnand %p1337_p3, %p1827_p7 }
 0x4a3   : > { %p1343_p4 = por %p1342_p5, %p1341_p9 }
 0x4a4   : > { %p1339_p6 = pneg %p1338_p0 }
 0x4a5   : > { %p1345_p10 = por %p1344_p2, %p1343_p4 }
 0x4a7   : > { %p1346_p1 = pnand %p1345_p10, %p1339_p6 }
 0x4a9   : > { %1349 = shalt.err (!%p1346_p1)
}
 0x4aa   : > { %s1417_s14 = smov 256  }
 0x4ab   : > { %1068 = dma.vmem_to_hbm [thread:$0]  (%p1827_p7), %s1749_s28, 512, %s1754_s16, %s774_s30, %s1417_s14, %s1417_s14, %s1415_s7  }
 0x4ac PF: > { %s802_s19 = sand.u32 1, %s1388_s21   ;;  %p1828_p11 = scmp.ne.s32.totalorder %s1818_s13, 0 }
 0x4ad   : > { %p1829_p12 = scmp.ge.s32.totalorder %s1400_s24, 2  ;;  %s803_s25 = scalar_lea.sflag [#allocation4], %s802_s19 }
 0x4af   : > { %p1091_p13 = pnand %p1829_p12, %p1828_p11 }
 0x4b1   : > { %1383 = dma.done.wait (!%p1091_p13), %s803_s25, 512  }
 0x4b2   : > { %1385 = vsyncadd (!%p1091_p13), %s803_s25, 4294966784  ;;  %p22_p8 = scmp.ge.s32.totalorder %s1622_s15, 4   ;;  %s1830_s21 = smov %s1392_s22 }
 0x4b3   : > { %s1831_s22 = smov %s1396_s23  ;;  %s1832_s23 = smov %s1634_s10 }
 0x4b4   : > { %s1833_s24 = smov %s1622_s15  ;;  %24 = sbr.rel (!%p22_p8) target bundleno = 8 (0x8), region = 110 }
 0x4bb   :  { %808 = vsyncpa [#allocation3], 1 }
 0x4bc   :  { %810 = vsyncpa [#allocation3 + $0x1], 1 }
 0x4bd   :  { %811 = vsyncpa [#allocation6], 1 }
 0x4be   :  { %812 = vsyncpa [#allocation9], 1 }
 0x4bf   :  { %813 = vsyncpa [#allocation12], 1 }
 0x4c0   :  { %815 = vsyncpa [#allocation12 + $0x1], 1 }
 0x4c1   :  { %816 = vsyncpa [#allocation4], 1 }
 0x4c2   :  { %818 = vsyncpa [#allocation4 + $0x1], 1 }

</bundles_post_ra>
